<compile_context>
chip_gen: v7x
topology: tpu7x:2x2x1
jax: 0.10.0
libtpu: 0.0.40
codegen_flags: <defaults>
</compile_context>

<pallas_src>
import math
import jax
import jax.numpy as jnp
from jax.experimental import pallas as pl
from jax.experimental.pallas import tpu as pltpu


def _edge_decoder_kernel(zr_ref, zc_ref, w1a_ref, w1b_ref, b1_ref, w2_ref,
                         b2_ref, o_ref):
    # zr_ref/zc_ref: (TE, H) bf16     w1a_ref/w1b_ref: (H, H) bf16
    # b1_ref: (1, H) f32   w2_ref: (1, H) f32   b2_ref: (1, 1) f32 (SMEM)
    # o_ref: (TE, 1) f32
    h = jnp.dot(zr_ref[...], w1a_ref[...], preferred_element_type=jnp.float32)
    h = h + jnp.dot(zc_ref[...], w1b_ref[...], preferred_element_type=jnp.float32)
    h = jnp.maximum(h + b1_ref[...], 0.0)                  # bias + ReLU (f32, VPU)
    # lin2 (H -> 1): VPU multiply + XLU lane reduction instead of a (TE,H)x(H,1)
    # matmul that would use a single MXU output column.
    out = jnp.sum(h * w2_ref[...], axis=-1, keepdims=True) + b2_ref[0, 0]
    o_ref[...] = out.astype(o_ref.dtype)


def _round_up(x, m):
    return ((x + m - 1) // m) * m


def edge_decoder_pallas(z, edge_label_indices, params, *, tile_e_max=512):
    """z: [N, H] float32; edge_label_indices: [2, E] int. Returns [E] float32."""
    w1, b1, w2, b2 = params          # (2H, H), (1, H), (H, 1), (1, 1)
    H = z.shape[-1]
    row, col = edge_label_indices[0], edge_label_indices[1]

    # Endpoint gathers (plain-JAX indexing glue); the [E, 2H] concat is never
    # materialized -- W1 is split instead.
    # TODO(synk): an in-kernel gather (z resident in VMEM + scalar-prefetched
    # row/col indices) would also remove the [E, H] gather round-trips; kept
    # the XLA gather here for lowering robustness.
    zr = z[row].astype(jnp.bfloat16)             # [E, H]
    zc = z[col].astype(jnp.bfloat16)             # [E, H]
    E = zr.shape[0]

    # Edge tile: as large as possible (multiple of 8), but keep >= 2 grid steps
    # when there is enough work so both v7x TensorCores get something to do.
    E8 = max(8, _round_up(E, 8))
    tile_e = min(int(tile_e_max), E8)
    if E8 > 8 and E8 <= tile_e:
        tile_e = max(8, _round_up((E8 + 1) // 2, 8))
    E_pad = _round_up(max(E, 1), tile_e)
    if E_pad != E:
        pad = E_pad - E
        zr = jnp.pad(zr, ((0, pad), (0, 0)))
        zc = jnp.pad(zc, ((0, pad), (0, 0)))

    w1a = w1[:H].astype(jnp.bfloat16)            # (H, H)
    w1b = w1[H:].astype(jnp.bfloat16)            # (H, H)
    b1_row = b1.reshape(1, H).astype(jnp.float32)
    w2_row = w2.reshape(1, H).astype(jnp.float32)
    b2_sc = b2.reshape(1, 1).astype(jnp.float32)

    grid = (E_pad // tile_e,)

    # Scoped-VMEM budget: double-buffered bf16 feature tiles + weights + out,
    # with headroom.  (v5e default scoped VMEM is only 16 MiB.)
    feat_bytes = 2 * (2 * tile_e * H * 2)
    wt_bytes = 2 * (2 * H * H * 2 + 2 * H * 4)
    out_bytes = 2 * (tile_e * 4)
    vmem_limit = min(
        max(32 << 20, int(1.5 * (feat_bytes + wt_bytes + out_bytes)) + (4 << 20)),
        100 << 20,
    )

    out = pl.pallas_call(
        _edge_decoder_kernel,
        out_shape=jax.ShapeDtypeStruct((E_pad, 1), jnp.float32),
        grid_spec=pltpu.PrefetchScalarGridSpec(
            num_scalar_prefetch=0,
            grid=grid,
            in_specs=[
                pl.BlockSpec((tile_e, H), lambda i: (i, 0)),        # z[row] tile
                pl.BlockSpec((tile_e, H), lambda i: (i, 0)),        # z[col] tile
                pl.BlockSpec((H, H), lambda i: (0, 0)),             # W1a
                pl.BlockSpec((H, H), lambda i: (0, 0)),             # W1b
                pl.BlockSpec((1, H), lambda i: (0, 0)),             # b1
                pl.BlockSpec((1, H), lambda i: (0, 0)),             # w2 row
                pl.BlockSpec(memory_space=pltpu.MemorySpace.SMEM),  # b2 scalar
            ],
            out_specs=pl.BlockSpec((tile_e, 1), lambda i: (i, 0)),
        ),
        compiler_params=pltpu.CompilerParams(
            dimension_semantics=("parallel",),
            vmem_limit_bytes=vmem_limit,
        ),
    )(zr, zc, w1a, w1b, b1_row, w2_row, b2_sc)

    # .view(-1); padded rows (which hold relu(b1)@w2 + b2 garbage) are sliced off.
    return out[:E, 0]


def init_edge_decoder_params(key, hidden_channels):
    """Deterministic init matching torch.nn.Linear default (uniform +-1/sqrt(fan_in))."""
    H = hidden_channels
    k1, k2, k3, k4 = jax.random.split(key, 4)
    bound1 = 1.0 / math.sqrt(2 * H)
    bound2 = 1.0 / math.sqrt(H)
    # torch Linear stores weight as (out, in); kernel consumes (in, out).
    w1_t = jax.random.uniform(k1, (H, 2 * H), jnp.float32, -bound1, bound1)
    b1 = jax.random.uniform(k2, (H,), jnp.float32, -bound1, bound1)
    w2_t = jax.random.uniform(k3, (1, H), jnp.float32, -bound2, bound2)
    b2 = jax.random.uniform(k4, (1,), jnp.float32, -bound2, bound2)
    return (
        w1_t.T,                      # (2H, H)
        b1.reshape(1, H),            # (1, H)
        w2_t.T,                      # (H, 1)
        b2.reshape(1, 1),            # (1, 1)
    )


def edge_decoder_ref(z, edge_label_indices, params):
    """Pure-JAX f32 reference of the PyTorch forward."""
    w1, b1, w2, b2 = params
    row, col = edge_label_indices[0], edge_label_indices[1]
    x = jnp.concatenate([z[row], z[col]], axis=-1)
    x = jnp.maximum(x @ w1 + b1, 0.0)
    x = x @ w2 + b2
    return x.reshape(-1)


if __name__ == "__main__":
    key = jax.random.PRNGKey(0)
    k_z, k_idx1, k_idx2, k_param = jax.random.split(key, 4)

    N, H = 64, 32  # nodes, hidden_channels

    z = jax.random.normal(k_z, (N, H), jnp.float32)
    params = init_edge_decoder_params(k_param, H)

    # Case 1: tiny edge set (single tile, full-extent blocks).
    E1 = 8
    idx1 = jax.random.randint(k_idx1, (2, E1), 0, N, jnp.int32)
    out1 = jax.block_until_ready(edge_decoder_pallas(z, idx1, params))
    ref1 = edge_decoder_ref(z, idx1, params)
    assert out1.shape == (E1,)
    assert jnp.allclose(out1, ref1, atol=5e-2, rtol=5e-2), (out1, ref1)

    # Case 2: multi-tile grid with edge padding (exercises bf16 streaming path).
    E2 = 600
    idx2 = jax.random.randint(k_idx2, (2, E2), 0, N, jnp.int32)
    out2 = jax.block_until_ready(
        edge_decoder_pallas(z, idx2, params, tile_e_max=256))
    ref2 = edge_decoder_ref(z, idx2, params)
    assert out2.shape == (E2,)
    assert jnp.allclose(out2, ref2, atol=5e-2, rtol=5e-2), (out2, ref2)

    print("KERNEL_OK")
</pallas_src>

<mosaic_0001>
module attributes {stable_mosaic.version = 11 : i64} {
  func.func @_edge_decoder_kernel(%arg0: i32, %arg1: memref<8x32xbf16, #tpu.memory_space<vmem>>, %arg2: memref<8x32xbf16, #tpu.memory_space<vmem>>, %arg3: memref<32x32xbf16, #tpu.memory_space<vmem>>, %arg4: memref<32x32xbf16, #tpu.memory_space<vmem>>, %arg5: memref<1x32xf32, #tpu.memory_space<vmem>>, %arg6: memref<1x32xf32, #tpu.memory_space<vmem>>, %arg7: memref<1x1xf32, #tpu.memory_space<smem>>, %arg8: memref<8x1xf32, #tpu.memory_space<vmem>>) attributes {dimension_semantics = [#tpu.dimension_semantics<parallel>], iteration_bounds = array<i64: 1>, scalar_prefetch = 0 : i64, scratch_operands = 0 : i64, tpu.core_type = #tpu.core_type<tc>, window_params = [{transform_indices = @transform_0, window_bounds = array<i64: 8, 32>}, {transform_indices = @transform_1, window_bounds = array<i64: 8, 32>}, {pipeline_mode = #tpu.pipeline_mode<synchronous>, transform_indices = @transform_2, window_bounds = array<i64: 32, 32>}, {pipeline_mode = #tpu.pipeline_mode<synchronous>, transform_indices = @transform_3, window_bounds = array<i64: 32, 32>}, {pipeline_mode = #tpu.pipeline_mode<synchronous>, transform_indices = @transform_4, window_bounds = array<i64: 1, 32>}, {pipeline_mode = #tpu.pipeline_mode<synchronous>, transform_indices = @transform_5, window_bounds = array<i64: 1, 32>}, {transform_indices = @transform_6, window_bounds = array<i64: 1, 1>}, {transform_indices = @transform_7, window_bounds = array<i64: 8, 1>}]} {
    %c0 = arith.constant 0 : index
    %c0_0 = arith.constant 0 : index
    %0 = vector.load %arg1[%c0, %c0_0] : memref<8x32xbf16, #tpu.memory_space<vmem>>, vector<8x32xbf16>
    %c0_1 = arith.constant 0 : index
    %c0_2 = arith.constant 0 : index
    %1 = vector.load %arg3[%c0_1, %c0_2] : memref<32x32xbf16, #tpu.memory_space<vmem>>, vector<32x32xbf16>
    %cst = arith.constant dense<0.000000e+00> : vector<8x32xf32>
    %2 = tpu.matmul %0, %1, %cst {dimension_numbers = #tpu.dot_dimension_numbers<[1], [0], [0], [1], [0, 0, 1, 1], [], []>} : vector<8x32xbf16>, vector<32x32xbf16>, vector<8x32xf32> -> vector<8x32xf32>
    %c0_3 = arith.constant 0 : index
    %c0_4 = arith.constant 0 : index
    %3 = vector.load %arg2[%c0_3, %c0_4] : memref<8x32xbf16, #tpu.memory_space<vmem>>, vector<8x32xbf16>
    %c0_5 = arith.constant 0 : index
    %c0_6 = arith.constant 0 : index
    %4 = vector.load %arg4[%c0_5, %c0_6] : memref<32x32xbf16, #tpu.memory_space<vmem>>, vector<32x32xbf16>
    %cst_7 = arith.constant dense<0.000000e+00> : vector<8x32xf32>
    %5 = tpu.matmul %3, %4, %cst_7 {dimension_numbers = #tpu.dot_dimension_numbers<[1], [0], [0], [1], [0, 0, 1, 1], [], []>} : vector<8x32xbf16>, vector<32x32xbf16>, vector<8x32xf32> -> vector<8x32xf32>
    %6 = arith.addf %2, %5 : vector<8x32xf32>
    %c0_8 = arith.constant 0 : index
    %c0_9 = arith.constant 0 : index
    %7 = vector.load %arg5[%c0_8, %c0_9] : memref<1x32xf32, #tpu.memory_space<vmem>>, vector<1x32xf32>
    %8 = vector.broadcast %7 : vector<1x32xf32> to vector<8x32xf32>
    %9 = arith.addf %6, %8 : vector<8x32xf32>
    %cst_10 = arith.constant 0.000000e+00 : f32
    %10 = vector.broadcast %cst_10 : f32 to vector<8x32xf32>
    %11 = arith.maximumf %9, %10 : vector<8x32xf32>
    %c0_11 = arith.constant 0 : index
    %c0_12 = arith.constant 0 : index
    %12 = vector.load %arg6[%c0_11, %c0_12] : memref<1x32xf32, #tpu.memory_space<vmem>>, vector<1x32xf32>
    %13 = vector.broadcast %12 : vector<1x32xf32> to vector<8x32xf32>
    %14 = arith.mulf %11, %13 : vector<8x32xf32>
    %cst_13 = arith.constant dense<0.000000e+00> : vector<8xf32>
    %15 = vector.multi_reduction <add>, %14, %cst_13 [1] : vector<8x32xf32> to vector<8xf32>
    %16 = vector.shape_cast %15 : vector<8xf32> to vector<8x1xf32>
    %c0_14 = arith.constant 0 : index
    %c0_15 = arith.constant 0 : index
    %17 = memref.load %arg7[%c0_14, %c0_15] : memref<1x1xf32, #tpu.memory_space<smem>>
    %18 = vector.broadcast %17 : f32 to vector<8x1xf32>
    %19 = arith.addf %16, %18 : vector<8x1xf32>
    %c0_16 = arith.constant 0 : index
    %c0_17 = arith.constant 0 : index
    %20 = vector.load %arg8[%c0_16, %c0_17] : memref<8x1xf32, #tpu.memory_space<vmem>>, vector<8x1xf32>
    tpu.vector_store %arg8[%c0_16, %c0_17], %19 {strides = array<i32>} : memref<8x1xf32, #tpu.memory_space<vmem>>, vector<8x1xf32>,
    return
  }
  func.func @transform_0(%arg0: i32) -> (i32, i32) {
    %c0_i32 = arith.constant 0 : i32
    %c0_i32_0 = arith.constant 0 : i32
    return %arg0, %c0_i32 : i32, i32
  }
  func.func @transform_1(%arg0: i32) -> (i32, i32) {
    %c0_i32 = arith.constant 0 : i32
    %c0_i32_0 = arith.constant 0 : i32
    return %arg0, %c0_i32 : i32, i32
  }
  func.func @transform_2(%arg0: i32) -> (i32, i32) {
    %c0_i32 = arith.constant 0 : i32
    %c0_i32_0 = arith.constant 0 : i32
    %c0_i32_1 = arith.constant 0 : i32
    return %c0_i32, %c0_i32_0 : i32, i32
  }
  func.func @transform_3(%arg0: i32) -> (i32, i32) {
    %c0_i32 = arith.constant 0 : i32
    %c0_i32_0 = arith.constant 0 : i32
    %c0_i32_1 = arith.constant 0 : i32
    return %c0_i32, %c0_i32_0 : i32, i32
  }
  func.func @transform_4(%arg0: i32) -> (i32, i32) {
    %c0_i32 = arith.constant 0 : i32
    %c0_i32_0 = arith.constant 0 : i32
    %c0_i32_1 = arith.constant 0 : i32
    return %c0_i32, %c0_i32_0 : i32, i32
  }
  func.func @transform_5(%arg0: i32) -> (i32, i32) {
    %c0_i32 = arith.constant 0 : i32
    %c0_i32_0 = arith.constant 0 : i32
    %c0_i32_1 = arith.constant 0 : i32
    return %c0_i32, %c0_i32_0 : i32, i32
  }
  func.func @transform_6(%arg0: i32) -> (i32, i32) {
    %c0_i32 = arith.constant 0 : i32
    %c0_i32_0 = arith.constant 0 : i32
    %c0_i32_1 = arith.constant 0 : i32
    return %c0_i32, %c0_i32_0 : i32, i32
  }
  func.func @transform_7(%arg0: i32) -> (i32, i32) {
    %c0_i32 = arith.constant 0 : i32
    %c0_i32_0 = arith.constant 0 : i32
    return %arg0, %c0_i32 : i32, i32
  }
}

</mosaic_0001>

<bundles_post_ra>
// kernel: tpu_custom_call.1
= control target key start
LH: loop header
LB: loop body
LE: loop exit
PB: predicated region body
PF: predicated region fallthrough
CT: control target
= control target key end

     0   :  { %13 = vsyncpa [#allocation4], 0  ;;  %s437_s0 = inlined_call_operand.hbm [shape: bf16[8,32], index: 0, kind: input, shape index: {}]   ;;  %s438_s1 = inlined_call_operand.vmem [shape: bf16[8,32], index: 1, kind: input, shape index: {}]   ;;  %s439_s2 = inlined_call_operand.hbm [shape: bf16[32,32], index: 2, kind: input, shape index: {}]   ;;  %s440_s3 = inlined_call_operand.hbm [shape: bf16[32,32], index: 3, kind: input, shape index: {}]   ;;  %s441_s4 = inlined_call_operand.vmem [shape: f32[1,32], index: 4, kind: input, shape index: {}]   ;;  %s442_s5 = inlined_call_operand.vmem [shape: f32[1,32], index: 5, kind: input, shape index: {}]   ;;  %s443_s6 = inlined_call_operand.<no memory space> [shape: f32[1,1], index: 6, kind: input, shape index: {}]   ;;  %s444_s7 = inlined_call_operand.vmem [shape: f32[8,1], index: 7, kind: output, shape index: {}]  }
   0x1   :  { %14 = vsyncpa [#allocation6], 0  ;;  %s330_s24 = smov [#allocation5]   ;;  %s260_s28 = scalar_lea.hbm %s439_s2, 256 }
   0x2   :  { %s32_s25 = sshll.u32 %s330_s24, 4  ;;  %p261_p0 = scmp.ne.s32.totalorder %s439_s2, %s260_s28  ;;  %s33_s25 = int_to_ptr.vmem [resolvable:$true] %s32_s25 }
   0x3   :  { %p264_p1 = scmp.lt.u32.totalorder %s260_s28, %s439_s2 }
   0x5   :  { %p266_p2 = pnand %p264_p1, %p261_p0 }
   0x7   :  { %269 = shalt.err (!%p266_p2)
}
   0x8   :  { %s270_s10 = scalar_lea.vmem %s33_s25, 256  ;;  %p275_p4 = scmp.lt.s32.totalorder %s33_s25, %s33_s25 }
   0x9   :  { %p271_p3 = scmp.ne.s32.totalorder %s33_s25, %s270_s10  ;;  %p276_p5 = scmp.lt.s32.totalorder %s270_s10, %s270_s10 }
   0xb   :  { %p277_p6 = por %p276_p5, %p275_p4 }
   0xd   :  { %p278_p7 = pnand %p277_p6, %p271_p3 }
   0xf   :  { %281 = shalt.err (!%p278_p7)
}
  0x10   :  { %s331_s11 = smov 64   ;;  %s332_s12 = smov 4  }
  0x11   :  { %38 = dma.hbm_to_vmem [thread:$0]  %s439_s2, 256, %s33_s25, [#allocation6], %s331_s11, %s331_s11, %s332_s12  }
  0x12   :  { %s333_s15 = smov [#allocation3]   ;;  %s334_s17 = smov [#allocation7]  }
  0x13   :  { %s21_s16 = sshll.u32 %s333_s15, 4  ;;  %s44_s18 = sshll.u32 %s334_s17, 4  ;;  %s22_s16 = int_to_ptr.vmem [resolvable:$true] %s21_s16  ;;  %s45_s18 = int_to_ptr.vmem [resolvable:$true] %s44_s18 }
  0x14   :  { %s282_s21 = scalar_lea.hbm %s437_s0, 64 }
  0x15   :  { %p283_p8 = scmp.ne.s32.totalorder %s437_s0, %s282_s21  ;;  %p286_p9 = scmp.lt.u32.totalorder %s282_s21, %s437_s0 }
  0x17   :  { %p288_p10 = pnand %p286_p9, %p283_p8 }
  0x19   :  { %291 = shalt.err (!%p288_p10)
}
  0x1a   :  { %s292_s2 = scalar_lea.vmem %s22_s16, 64  ;;  %p297_p12 = scmp.lt.s32.totalorder %s22_s16, %s22_s16 }
  0x1b   :  { %p293_p11 = scmp.ne.s32.totalorder %s22_s16, %s292_s2  ;;  %p298_p13 = scmp.lt.s32.totalorder %s292_s2, %s292_s2 }
  0x1d   :  { %p299_p0 = por %p298_p13, %p297_p12 }
  0x1f   :  { %p300_p1 = pnand %p299_p0, %p293_p11 }
  0x21   :  { %303 = shalt.err (!%p300_p1)
}
  0x22   :  { %24 = dma.hbm_to_vmem [thread:$0]  %s437_s0, 64, %s22_s16, [#allocation4]  }
  0x23   :  { %s304_s30 = scalar_lea.hbm %s440_s3, 256 }
  0x24   :  { %p305_p2 = scmp.ne.s32.totalorder %s440_s3, %s304_s30  ;;  %p308_p3 = scmp.lt.u32.totalorder %s304_s30, %s440_s3 }
  0x26   :  { %p310_p4 = pnand %p308_p3, %p305_p2 }
  0x28   :  { %313 = shalt.err (!%p310_p4)
}
  0x29   :  { %s314_s14 = scalar_lea.vmem %s45_s18, 256  ;;  %p319_p6 = scmp.lt.s32.totalorder %s45_s18, %s45_s18 }
  0x2a   :  { %p315_p5 = scmp.ne.s32.totalorder %s45_s18, %s314_s14  ;;  %p320_p7 = scmp.lt.s32.totalorder %s314_s14, %s314_s14 }
  0x2c   :  { %p321_p8 = por %p320_p7, %p319_p6 }
  0x2e   :  { %p322_p9 = pnand %p321_p8, %p315_p5 }
  0x30   :  { %325 = shalt.err (!%p322_p9)
}
  0x31   :  { %50 = dma.hbm_to_vmem [thread:$0]  %s440_s3, 256, %s45_s18, [#allocation6], %s331_s11, %s331_s11, %s332_s12  }
  0x32   :  { %326 = dma.done.wait [#allocation4], 64  }
  0x33   :  { %327 = vsyncadd [#allocation4], 4294967232 }
  0x34   :  { %328 = dma.done.wait [#allocation6], 512  }
  0x35   :  { %329 = vsyncadd [#allocation6], 4294966784  ;;  %v335_v0 = vmov 0.0   ;;  %vm336_vm0 = vmmov 0   ;;  %v256_v1 = vld [vmem:[#allocation7] sm:$0xff]   ;;  %v257_v2 = vld [vmem:[#allocation5] sm:$0xff]   ;;  %v209_v22 = vstv %s443_s6 }
  0x36   :  { %233 = vmatprep.subr.bf16.mxu0 %v335_v0  ;;  %241 = vmatprep.subr.bf16.mxu1 %v335_v0  ;;  %v258_v3 = vld [vmem:[#allocation7 + $0x8] sm:$0xff]   ;;  %v259_v4 = vld [vmem:[#allocation5 + $0x8] sm:$0xff]   ;;  %vm89_vm1 = vcmask 261120   ;;  %vm211_vm2 = vcmask 7168  }
  0x37   :  { %237 = vmatprep.mubr.msk.bf16.mxu0 %vm336_vm0, %v335_v0  ;;  %245 = vmatprep.mubr.msk.bf16.mxu1 %vm336_vm0, %v335_v0  ;;  %v72_v5 = vld [vmem:[%s438_s1] sm:$0xf] }
  0x38   :  { %234 = vmatpush3.bf16.msra.mxu0 %v256_v1  ;;  %242 = vmatpush3.bf16.msra.mxu1 %v257_v2  ;;  %v67_v6 = vld [vmem:[#allocation3] sm:$0xf] }
  0x39   :  { %235 = vmatprep.subr.bf16.mxu0 %v335_v0  ;;  %243 = vmatprep.subr.bf16.mxu1 %v335_v0  ;;  %v225_v9 = vld [vmem:[%s441_s4] ss:$0 sm:$0xff] }
  0x3a   :  { %v226_v18 = vld [vmem:[%s442_s5] ss:$0 sm:$0xff] }
  0x3c   :  { %236 = vmatpush3.bf16.msra.mxu0 %v258_v3  ;;  %244 = vmatpush3.bf16.msra.mxu1 %v259_v4 }
  0x3f   :  { %238 = vmatmul.mubr.msk.bf16.vlgmr.msra.gmra.mrb[0].mxu0 %vm89_vm1, %v72_v5  ;;  %246 = vmatmul.mubr.msk.bf16.vlgmr.msra.gmra.mrb[0].mxu1 %vm89_vm1, %v67_v6 }
 0x112   :  { %v127_v7 = vpop.f32.mrb[0].mxu0  ;;  %v182_v8 = vpop.f32.mrb[0].mxu1 }
 0x113   :  { %v239_v10 = vpop.f32.mrb[1].mxu0  ;;  %v183_v11 = vadd.f32 %v182_v8, %v127_v7  ;;  %v247_v12 = vpop.f32.mrb[1].mxu1 }
 0x114   :  { %v130_v13 = vpop.f32.mrb[2].mxu0  ;;  %v185_v14 = vpop.f32.mrb[2].mxu1 }
 0x115   :  { %v240_v15 = vpop.f32.mrb[3].mxu0  ;;  %v195_v16 = vadd.f32 %v225_v9, %v183_v11  ;;  %v248_v17 = vpop.f32.mrb[3].mxu1 }
 0x117   :  { %v196_v19 = vmax.f32 %v195_v16, 0.0 }
 0x119   :  { %v204_v20 = vmul.f32 %v226_v18, %v196_v19 }
 0x11b   :  { %v205_v21 = vsel %vm89_vm1, %v204_v20, 0.0 }
 0x11c   :  { %206 = vadd.xlane.f32.xlu0 %v205_v21 }
 0x1a9   :  { %v207_v23 = vpop.xlane.xlu0 %206 }
 0x1aa   :  { %v210_v24 = vadd.f32 %v209_v22, %v207_v23 }
 0x1ac   :  { %212 = vst.msk [vmem:[%s444_s7] sm:$0xff] %vm211_vm2, %v210_v24 }
 0x1ad   :  { %217 = vsyncpa [#allocation4], 1 }
 0x1ae   :  { %218 = vsyncpa [#allocation6], 1 }

</bundles_post_ra>
